<compile_context>
chip_gen: v5e
topology: v5e:2x2
jax: 0.10.0
libtpu: 0.0.40
codegen_flags: <defaults>
</compile_context>

<pallas_src>
import functools

import jax
import jax.numpy as jnp
from jax.experimental import pallas as pl
from jax.experimental.pallas import tpu as pltpu

LANE = 128        # TPU lane width
MIN_TILE_B = 16   # bf16 packs 16 sublanes/vreg -> avoid sub-native relayout (v6e/v7x)
MAX_TILE_B = 256  # fills the 256x256 MXU M-dim on v6e/v7x; drop to 128 on v5e


def _round_up(x, m):
    return (x + m - 1) // m * m


# ----------------------------- fused Pallas kernel ----------------------------

def _vae_fused_kernel(x_ref, eps_ref,
                      w1_ref, b1_ref, wh_ref, bh_ref,
                      w3_ref, b3_ref, w4_ref, b4_ref,
                      mv_ref, xhat_ref):
    """Encoder MLP -> reparameterization -> decoder MLP (one batch tile)."""
    zp = wh_ref.shape[1] // 2  # lane-padded latent width (multiple of 128)

    # x arrives f32 from HBM (no wrapper-side cast pass); cast to bf16 for the MXU.
    x = x_ref[...].astype(jnp.bfloat16)

    # ---- encoder: Linear -> ReLU (bf16 MXU, f32 accumulate) -------------------
    h = jnp.dot(x, w1_ref[...], preferred_element_type=jnp.float32) + b1_ref[...]
    h = jnp.maximum(h, 0.0).astype(jnp.bfloat16)

    # ---- fused mean|logvar heads: single lane-dense matmul --------------------
    mv = jnp.dot(h, wh_ref[...], preferred_element_type=jnp.float32) + bh_ref[...]
    mv_ref[...] = mv  # lane-dense (tile_b, 2*zp) unmasked store

    mean_p = mv[:, :zp]      # lane-aligned 128-wide slices (no cross-lane shuffle)
    logvar_p = mv[:, zp:]

    # ---- reparameterization: z = mean + eps * exp(logvar / 2), f32 ------------
    std = jnp.exp(logvar_p * 0.5)
    z = mean_p + eps_ref[...] * std  # padded lanes hit zero rows of w3 -> no effect

    # ---- decoder: Linear -> ReLU -> Linear ------------------------------------
    hd = jnp.dot(z.astype(jnp.bfloat16), w3_ref[...],
                 preferred_element_type=jnp.float32) + b3_ref[...]
    hd = jnp.maximum(hd, 0.0).astype(jnp.bfloat16)
    xhat_ref[...] = (jnp.dot(hd, w4_ref[...], preferred_element_type=jnp.float32)
                     + b4_ref[...]).astype(xhat_ref.dtype)


# ------------------------------- host wrappers --------------------------------

@functools.partial(jax.jit, static_argnames=("tile_b",))
def _vae_fused_call(x_flat, eps, params, *, tile_b):
    B, d_in = x_flat.shape
    d_hidden = params["w1"].shape[1]
    zp2 = params["wh"].shape[1]          # 2 * lane-padded latent width
    zp = zp2 // 2

    # TODO(synk): for large / non-lane-aligned d_in, d_hidden add a K-tiling
    # reduction grid axis ("arbitrary") with f32 VMEM accumulators for the w1/w4
    # matmuls so only weight tiles are resident (needed at real model sizes on
    # v7x's 64 MiB VMEM).
    assert d_in % LANE == 0 and d_hidden % LANE == 0

    b_pad = _round_up(B, tile_b)
    if b_pad != B:
        x_flat = jnp.pad(x_flat, ((0, b_pad - B), (0, 0)))
        eps = jnp.pad(eps, ((0, b_pad - B), (0, 0)))

    grid = (b_pad // tile_b,)

    # Grid-invariant weights/biases: single-buffer them on the Mosaic path
    # (double-buffering buys zero overlap, only doubles weight VMEM). On the
    # CPU/interpret fallback leave the default (pipelining is not emulated).
    w_mode = pl.Buffered(1) if jax.default_backend() == "tpu" else None
    full = lambda i: (0, 0)
    wspec = lambda shape: pl.BlockSpec(shape, full, pipeline_mode=w_mode)

    # Explicit VMEM budget: single-buffered weights + double-buffered tiles
    # + headroom. Keeps the larger batch tile viable within v7x's 64 MiB.
    weight_bytes = sum(int(params[k].size) * params[k].dtype.itemsize
                       for k in ("w1", "b1", "wh", "bh", "w3", "b3", "w4", "b4"))
    tile_bytes = 2 * (tile_b * d_in * 4 + tile_b * zp * 4     # x, eps inputs
                      + tile_b * zp2 * 4 + tile_b * d_in * 4)  # mv, x_hat outputs
    vmem_limit = int(min(96 << 20, max(16 << 20, weight_bytes + tile_bytes + (8 << 20))))

    flops = 2 * b_pad * (d_in * d_hidden + d_hidden * zp2
                         + zp * d_hidden + d_hidden * d_in)
    bytes_accessed = (b_pad * d_in * 4 + b_pad * zp * 4       # x, eps in
                      + weight_bytes
                      + b_pad * zp2 * 4 + b_pad * d_in * 4)    # mv, x_hat out

    mv, x_hat = pl.pallas_call(
        _vae_fused_kernel,
        out_shape=(jax.ShapeDtypeStruct((b_pad, zp2), jnp.float32),
                   jax.ShapeDtypeStruct((b_pad, d_in), x_flat.dtype)),
        grid=grid,
        in_specs=[
            pl.BlockSpec((tile_b, d_in), lambda i: (i, 0)),   # x   (f32, cast in kernel)
            pl.BlockSpec((tile_b, zp), lambda i: (i, 0)),     # eps (f32)
            wspec((d_in, d_hidden)),                          # w1
            wspec((1, d_hidden)),                             # b1
            wspec((d_hidden, zp2)),                           # w_mean|logvar
            wspec((1, zp2)),                                  # b_mean|logvar
            wspec((zp, d_hidden)),                            # w3 (K padded, zero rows)
            wspec((1, d_hidden)),                             # b3
            wspec((d_hidden, d_in)),                          # w4
            wspec((1, d_in)),                                 # b4
        ],
        out_specs=(pl.BlockSpec((tile_b, zp2), lambda i: (i, 0)),
                   pl.BlockSpec((tile_b, d_in), lambda i: (i, 0))),
        compiler_params=pltpu.CompilerParams(
            dimension_semantics=("parallel",),                # megacore sharding
            vmem_limit_bytes=vmem_limit),
        cost_estimate=pl.CostEstimate(
            flops=int(flops),
            transcendentals=int(b_pad * zp),                  # exp for std (eps is host-side)
            bytes_accessed=int(bytes_accessed)),
    )(x_flat, eps,
      params["w1"], params["b1"], params["wh"], params["bh"],
      params["w3"], params["b3"], params["w4"], params["b4"])
    return x_hat, mv


def vae_forward(x_nchw, params, rng_key, d_latent):
    """Full VAE forward. Returns (x_hat, mean, logvar) matching the torch module."""
    B, C, H, W = x_nchw.shape
    zp = params["wh"].shape[1] // 2
    tile_b = min(MAX_TILE_B, _round_up(B, MIN_TILE_B))
    # eps ~ N(0,1) (== torch.randn_like). Drawn over the padded latent width;
    # padded lanes are annihilated by w3's zero rows inside the kernel.
    eps = jax.random.normal(rng_key, (B, zp), dtype=jnp.float32)
    x_hat_flat, mv = _vae_fused_call(
        x_nchw.reshape(B, C * H * W), eps, params, tile_b=tile_b)
    mean = mv[:B, :d_latent]
    logvar = mv[:B, zp:zp + d_latent]
    x_hat = x_hat_flat[:B].reshape(B, C, H, W)
    return x_hat, mean, logvar


# ------------------------------- parameter init --------------------------------

def init_params(key, d_in, d_hidden, d_latent):
    """Concrete MLP encoder/decoder weights, packed into the lane-padded layout."""
    zp = _round_up(d_latent, LANE)
    ks = jax.random.split(key, 5)
    s_in = 1.0 / jnp.sqrt(jnp.float32(d_in))
    s_h = 1.0 / jnp.sqrt(jnp.float32(d_hidden))
    s_z = 1.0 / jnp.sqrt(jnp.float32(d_latent))

    wm = jax.random.normal(ks[1], (d_hidden, d_latent), jnp.float32) * s_h
    wv = jax.random.normal(ks[2], (d_hidden, d_latent), jnp.float32) * s_h
    wh = jnp.zeros((d_hidden, 2 * zp), jnp.float32)
    wh = wh.at[:, :d_latent].set(wm).at[:, zp:zp + d_latent].set(wv)

    w3 = jax.random.normal(ks[3], (d_latent, d_hidden), jnp.float32) * s_z
    w3p = jnp.zeros((zp, d_hidden), jnp.float32).at[:d_latent].set(w3)

    return {
        # encoder
        "w1": (jax.random.normal(ks[0], (d_in, d_hidden), jnp.float32)
               * s_in).astype(jnp.bfloat16),
        "b1": jnp.zeros((1, d_hidden), jnp.float32),
        "wh": wh.astype(jnp.bfloat16),           # [mean head | logvar head], lane padded
        "bh": jnp.zeros((1, 2 * zp), jnp.float32),
        # decoder
        "w3": w3p.astype(jnp.bfloat16),          # K padded to 128 with zero rows
        "b3": jnp.zeros((1, d_hidden), jnp.float32),
        "w4": (jax.random.normal(ks[4], (d_hidden, d_in), jnp.float32)
               * s_h).astype(jnp.bfloat16),
        "b4": jnp.zeros((1, d_in), jnp.float32),
    }


# ------------------------------------ main --------------------------------------

if __name__ == "__main__":
    B, C, H, W = 2, 4, 16, 16
    D_IN = C * H * W          # 1024
    D_HIDDEN = 128            # note: multiples of 256 fill the v6e/v7x MXU K/N better
    D_LATENT = 32

    root = jax.random.PRNGKey(0)
    k_x, k_params, k_eps = jax.random.split(root, 3)

    x = jax.random.normal(k_x, (B, C, H, W), dtype=jnp.float32)
    params = init_params(k_params, D_IN, D_HIDDEN, D_LATENT)

    x_hat, mean, logvar = vae_forward(x, params, k_eps, D_LATENT)
    jax.block_until_ready((x_hat, mean, logvar))

    assert x_hat.shape == (B, C, H, W)
    assert mean.shape == (B, D_LATENT)
    assert logvar.shape == (B, D_LATENT)
    assert bool(jnp.all(jnp.isfinite(x_hat)))
    assert bool(jnp.all(jnp.isfinite(mean)))
    assert bool(jnp.all(jnp.isfinite(logvar)))

    print("KERNEL_OK")
</pallas_src>

<mosaic_0001>
module attributes {stable_mosaic.version = 11 : i64} {
  func.func @_vae_fused_kernel(%arg0: i32, %arg1: memref<16x1024xf32, #tpu.memory_space<vmem>>, %arg2: memref<16x128xf32, #tpu.memory_space<vmem>>, %arg3: memref<1024x128xbf16, #tpu.memory_space<vmem>>, %arg4: memref<1x128xf32, #tpu.memory_space<vmem>>, %arg5: memref<128x256xbf16, #tpu.memory_space<vmem>>, %arg6: memref<1x256xf32, #tpu.memory_space<vmem>>, %arg7: memref<128x128xbf16, #tpu.memory_space<vmem>>, %arg8: memref<1x128xf32, #tpu.memory_space<vmem>>, %arg9: memref<128x1024xbf16, #tpu.memory_space<vmem>>, %arg10: memref<1x1024xf32, #tpu.memory_space<vmem>>, %arg11: memref<16x256xf32, #tpu.memory_space<vmem>>, %arg12: memref<16x1024xf32, #tpu.memory_space<vmem>>) attributes {dimension_semantics = [#tpu.dimension_semantics<parallel>], iteration_bounds = array<i64: 1>, scalar_prefetch = 0 : i64, scratch_operands = 0 : i64, tpu.core_type = #tpu.core_type<tc>, window_params = [{transform_indices = @transform_0, window_bounds = array<i64: 16, 1024>}, {transform_indices = @transform_1, window_bounds = array<i64: 16, 128>}, {pipeline_mode = #tpu.pipeline_mode<synchronous>, transform_indices = @transform_2, window_bounds = array<i64: 1024, 128>}, {pipeline_mode = #tpu.pipeline_mode<synchronous>, transform_indices = @transform_3, window_bounds = array<i64: 1, 128>}, {pipeline_mode = #tpu.pipeline_mode<synchronous>, transform_indices = @transform_4, window_bounds = array<i64: 128, 256>}, {pipeline_mode = #tpu.pipeline_mode<synchronous>, transform_indices = @transform_5, window_bounds = array<i64: 1, 256>}, {pipeline_mode = #tpu.pipeline_mode<synchronous>, transform_indices = @transform_6, window_bounds = array<i64: 128, 128>}, {pipeline_mode = #tpu.pipeline_mode<synchronous>, transform_indices = @transform_7, window_bounds = array<i64: 1, 128>}, {pipeline_mode = #tpu.pipeline_mode<synchronous>, transform_indices = @transform_8, window_bounds = array<i64: 128, 1024>}, {pipeline_mode = #tpu.pipeline_mode<synchronous>, transform_indices = @transform_9, window_bounds = array<i64: 1, 1024>}, {transform_indices = @transform_10, window_bounds = array<i64: 16, 256>}, {transform_indices = @transform_11, window_bounds = array<i64: 16, 1024>}]} {
    %c0 = arith.constant 0 : index
    %c0_0 = arith.constant 0 : index
    %0 = vector.load %arg1[%c0, %c0_0] : memref<16x1024xf32, #tpu.memory_space<vmem>>, vector<16x1024xf32>
    %1 = arith.truncf %0 : vector<16x1024xf32> to vector<16x1024xbf16>
    %c0_1 = arith.constant 0 : index
    %c0_2 = arith.constant 0 : index
    %2 = vector.load %arg3[%c0_1, %c0_2] : memref<1024x128xbf16, #tpu.memory_space<vmem>>, vector<1024x128xbf16>
    %cst = arith.constant dense<0.000000e+00> : vector<16x128xf32>
    %3 = tpu.matmul %1, %2, %cst {dimension_numbers = #tpu.dot_dimension_numbers<[1], [0], [0], [1], [0, 0, 1, 1], [], []>} : vector<16x1024xbf16>, vector<1024x128xbf16>, vector<16x128xf32> -> vector<16x128xf32>
    %c0_3 = arith.constant 0 : index
    %c0_4 = arith.constant 0 : index
    %4 = vector.load %arg4[%c0_3, %c0_4] : memref<1x128xf32, #tpu.memory_space<vmem>>, vector<1x128xf32>
    %5 = vector.broadcast %4 : vector<1x128xf32> to vector<16x128xf32>
    %6 = arith.addf %3, %5 : vector<16x128xf32>
    %cst_5 = arith.constant 0.000000e+00 : f32
    %7 = vector.broadcast %cst_5 : f32 to vector<16x128xf32>
    %8 = arith.maximumf %6, %7 : vector<16x128xf32>
    %9 = arith.truncf %8 : vector<16x128xf32> to vector<16x128xbf16>
    %c0_6 = arith.constant 0 : index
    %c0_7 = arith.constant 0 : index
    %10 = vector.load %arg5[%c0_6, %c0_7] : memref<128x256xbf16, #tpu.memory_space<vmem>>, vector<128x256xbf16>
    %cst_8 = arith.constant dense<0.000000e+00> : vector<16x256xf32>
    %11 = tpu.matmul %9, %10, %cst_8 {dimension_numbers = #tpu.dot_dimension_numbers<[1], [0], [0], [1], [0, 0, 1, 1], [], []>} : vector<16x128xbf16>, vector<128x256xbf16>, vector<16x256xf32> -> vector<16x256xf32>
    %c0_9 = arith.constant 0 : index
    %c0_10 = arith.constant 0 : index
    %12 = vector.load %arg6[%c0_9, %c0_10] : memref<1x256xf32, #tpu.memory_space<vmem>>, vector<1x256xf32>
    %13 = vector.broadcast %12 : vector<1x256xf32> to vector<16x256xf32>
    %14 = arith.addf %11, %13 : vector<16x256xf32>
    %c0_11 = arith.constant 0 : index
    %c0_12 = arith.constant 0 : index
    %15 = vector.load %arg11[%c0_11, %c0_12] : memref<16x256xf32, #tpu.memory_space<vmem>>, vector<16x256xf32>
    tpu.vector_store %arg11[%c0_11, %c0_12], %14 {strides = array<i32>} : memref<16x256xf32, #tpu.memory_space<vmem>>, vector<16x256xf32>,
    %16 = vector.extract_strided_slice %14 {offsets = [0, 0], sizes = [16, 128], strides = [1, 1]} : vector<16x256xf32> to vector<16x128xf32>
    %17 = vector.extract_strided_slice %14 {offsets = [0, 128], sizes = [16, 128], strides = [1, 1]} : vector<16x256xf32> to vector<16x128xf32>
    %cst_13 = arith.constant 5.000000e-01 : f32
    %18 = vector.broadcast %cst_13 : f32 to vector<16x128xf32>
    %19 = arith.mulf %17, %18 : vector<16x128xf32>
    %20 = math.exp %19 : vector<16x128xf32>
    %c0_14 = arith.constant 0 : index
    %c0_15 = arith.constant 0 : index
    %21 = vector.load %arg2[%c0_14, %c0_15] : memref<16x128xf32, #tpu.memory_space<vmem>>, vector<16x128xf32>
    %22 = arith.mulf %21, %20 : vector<16x128xf32>
    %23 = arith.addf %16, %22 : vector<16x128xf32>
    %24 = arith.truncf %23 : vector<16x128xf32> to vector<16x128xbf16>
    %c0_16 = arith.constant 0 : index
    %c0_17 = arith.constant 0 : index
    %25 = vector.load %arg7[%c0_16, %c0_17] : memref<128x128xbf16, #tpu.memory_space<vmem>>, vector<128x128xbf16>
    %cst_18 = arith.constant dense<0.000000e+00> : vector<16x128xf32>
    %26 = tpu.matmul %24, %25, %cst_18 {dimension_numbers = #tpu.dot_dimension_numbers<[1], [0], [0], [1], [0, 0, 1, 1], [], []>} : vector<16x128xbf16>, vector<128x128xbf16>, vector<16x128xf32> -> vector<16x128xf32>
    %c0_19 = arith.constant 0 : index
    %c0_20 = arith.constant 0 : index
    %27 = vector.load %arg8[%c0_19, %c0_20] : memref<1x128xf32, #tpu.memory_space<vmem>>, vector<1x128xf32>
    %28 = vector.broadcast %27 : vector<1x128xf32> to vector<16x128xf32>
    %29 = arith.addf %26, %28 : vector<16x128xf32>
    %cst_21 = arith.constant 0.000000e+00 : f32
    %30 = vector.broadcast %cst_21 : f32 to vector<16x128xf32>
    %31 = arith.maximumf %29, %30 : vector<16x128xf32>
    %32 = arith.truncf %31 : vector<16x128xf32> to vector<16x128xbf16>
    %c0_22 = arith.constant 0 : index
    %c0_23 = arith.constant 0 : index
    %33 = vector.load %arg9[%c0_22, %c0_23] : memref<128x1024xbf16, #tpu.memory_space<vmem>>, vector<128x1024xbf16>
    %cst_24 = arith.constant dense<0.000000e+00> : vector<16x1024xf32>
    %34 = tpu.matmul %32, %33, %cst_24 {dimension_numbers = #tpu.dot_dimension_numbers<[1], [0], [0], [1], [0, 0, 1, 1], [], []>} : vector<16x128xbf16>, vector<128x1024xbf16>, vector<16x1024xf32> -> vector<16x1024xf32>
    %c0_25 = arith.constant 0 : index
    %c0_26 = arith.constant 0 : index
    %35 = vector.load %arg10[%c0_25, %c0_26] : memref<1x1024xf32, #tpu.memory_space<vmem>>, vector<1x1024xf32>
    %36 = vector.broadcast %35 : vector<1x1024xf32> to vector<16x1024xf32>
    %37 = arith.addf %34, %36 : vector<16x1024xf32>
    %c0_27 = arith.constant 0 : index
    %c0_28 = arith.constant 0 : index
    %38 = vector.load %arg12[%c0_27, %c0_28] : memref<16x1024xf32, #tpu.memory_space<vmem>>, vector<16x1024xf32>
    tpu.vector_store %arg12[%c0_27, %c0_28], %37 {strides = array<i32>} : memref<16x1024xf32, #tpu.memory_space<vmem>>, vector<16x1024xf32>,
    return
  }
  func.func @transform_0(%arg0: i32) -> (i32, i32) {
    %c0_i32 = arith.constant 0 : i32
    %c0_i32_0 = arith.constant 0 : i32
    return %arg0, %c0_i32 : i32, i32
  }
  func.func @transform_1(%arg0: i32) -> (i32, i32) {
    %c0_i32 = arith.constant 0 : i32
    %c0_i32_0 = arith.constant 0 : i32
    return %arg0, %c0_i32 : i32, i32
  }
  func.func @transform_2(%arg0: i32) -> (i32, i32) {
    %c0_i32 = arith.constant 0 : i32
    %c0_i32_0 = arith.constant 0 : i32
    %c0_i32_1 = arith.constant 0 : i32
    return %c0_i32, %c0_i32_0 : i32, i32
  }
  func.func @transform_3(%arg0: i32) -> (i32, i32) {
    %c0_i32 = arith.constant 0 : i32
    %c0_i32_0 = arith.constant 0 : i32
    %c0_i32_1 = arith.constant 0 : i32
    return %c0_i32, %c0_i32_0 : i32, i32
  }
  func.func @transform_4(%arg0: i32) -> (i32, i32) {
    %c0_i32 = arith.constant 0 : i32
    %c0_i32_0 = arith.constant 0 : i32
    %c0_i32_1 = arith.constant 0 : i32
    return %c0_i32, %c0_i32_0 : i32, i32
  }
  func.func @transform_5(%arg0: i32) -> (i32, i32) {
    %c0_i32 = arith.constant 0 : i32
    %c0_i32_0 = arith.constant 0 : i32
    %c0_i32_1 = arith.constant 0 : i32
    return %c0_i32, %c0_i32_0 : i32, i32
  }
  func.func @transform_6(%arg0: i32) -> (i32, i32) {
    %c0_i32 = arith.constant 0 : i32
    %c0_i32_0 = arith.constant 0 : i32
    %c0_i32_1 = arith.constant 0 : i32
    return %c0_i32, %c0_i32_0 : i32, i32
  }
  func.func @transform_7(%arg0: i32) -> (i32, i32) {
    %c0_i32 = arith.constant 0 : i32
    %c0_i32_0 = arith.constant 0 : i32
    %c0_i32_1 = arith.constant 0 : i32
    return %c0_i32, %c0_i32_0 : i32, i32
  }
  func.func @transform_8(%arg0: i32) -> (i32, i32) {
    %c0_i32 = arith.constant 0 : i32
    %c0_i32_0 = arith.constant 0 : i32
    %c0_i32_1 = arith.constant 0 : i32
    return %c0_i32, %c0_i32_0 : i32, i32
  }
  func.func @transform_9(%arg0: i32) -> (i32, i32) {
    %c0_i32 = arith.constant 0 : i32
    %c0_i32_0 = arith.constant 0 : i32
    %c0_i32_1 = arith.constant 0 : i32
    return %c0_i32, %c0_i32_0 : i32, i32
  }
  func.func @transform_10(%arg0: i32) -> (i32, i32) {
    %c0_i32 = arith.constant 0 : i32
    %c0_i32_0 = arith.constant 0 : i32
    return %arg0, %c0_i32 : i32, i32
  }
  func.func @transform_11(%arg0: i32) -> (i32, i32) {
    %c0_i32 = arith.constant 0 : i32
    %c0_i32_0 = arith.constant 0 : i32
    return %arg0, %c0_i32 : i32, i32
  }
}

</mosaic_0001>

<bundles_post_ra>
// kernel: _vae_fused_call.1
= control target key start
LH: loop header
LB: loop body
LE: loop exit
PB: predicated region body
PF: predicated region fallthrough
CT: control target
= control target key end

     0   :  { %17 = vsyncpa [#allocation3], 0  ;;  %s2721_s0 = inlined_call_operand.vmem [shape: f32[16,1024], index: 0, kind: input, shape index: {}]   ;;  %s2722_s1 = inlined_call_operand.vmem [shape: f32[16,128], index: 1, kind: input, shape index: {}]   ;;  %s2723_s2 = inlined_call_operand.hbm [shape: bf16[1024,128], index: 2, kind: input, shape index: {}]   ;;  %s2724_s3 = inlined_call_operand.vmem [shape: f32[1,128], index: 3, kind: input, shape index: {}]   ;;  %s2725_s4 = inlined_call_operand.vmem [shape: bf16[128,256], index: 4, kind: input, shape index: {}]   ;;  %s2726_s5 = inlined_call_operand.vmem [shape: f32[1,256], index: 5, kind: input, shape index: {}]   ;;  %s2727_s6 = inlined_call_operand.hbm [shape: bf16[128,128], index: 6, kind: input, shape index: {}]   ;;  %s2728_s7 = inlined_call_operand.vmem [shape: f32[1,128], index: 7, kind: input, shape index: {}]   ;;  %s2729_s8 = inlined_call_operand.hbm [shape: bf16[128,1024], index: 8, kind: input, shape index: {}]   ;;  %s2730_s9 = inlined_call_operand.vmem [shape: f32[1,1024], index: 9, kind: input, shape index: {}]   ;;  %s2731_s10 = inlined_call_operand.hbm [shape: f32[16,256], index: 10, kind: output, shape index: {0}]   ;;  %s2732_s11 = inlined_call_operand.hbm [shape: f32[16,1024], index: 11, kind: output, shape index: {1}]  }
   0x1   :  { %18 = vsyncpa [#allocation6], 0 }
   0x2   :  { %19 = vsyncpa [#allocation4], 0 }
   0x3   :  { %20 = vsyncpa [#allocation10], 0  ;;  %s48_s19 = sshll.u32 %s2727_s6, 4  ;;  %s2447_s20 = smov [#allocation5]   ;;  %s49_s19 = int_to_ptr.hbm [resolvable:$true] %s48_s19 }
   0x4   :  { %s50_s21 = sshll.u32 %s2447_s20, 4  ;;  %s29_s24 = sshll.u32 %s2723_s2, 4  ;;  %s51_s21 = int_to_ptr.vmem [resolvable:$true] %s50_s21  ;;  %s30_s24 = int_to_ptr.hbm [resolvable:$true] %s29_s24 }
   0x5   :  { %s2448_s25 = smov 64   ;;  %s2449_s26 = smov 4  }
   0x6   :  { %56 = dma.hbm_to_vmem [thread:$0]  %s49_s19, 1024, %s51_s21, [#allocation6], %s2448_s25, %s2448_s25, %s2449_s26  }
   0x7   :  { %s2450_s27 = smov [#allocation2]   ;;  %s63_s6 = sshll.u32 %s2729_s8, 4  ;;  %s64_s6 = int_to_ptr.hbm [resolvable:$true] %s63_s6 }
   0x8   :  { %s31_s28 = sshll.u32 %s2450_s27, 4  ;;  %s2451_s12 = smov [#allocation7]   ;;  %s32_s28 = int_to_ptr.vmem [resolvable:$true] %s31_s28 }
   0x9   :  { %37 = dma.hbm_to_vmem [thread:$0]  %s30_s24, 8192, %s32_s28, [#allocation3], %s2448_s25, %s2448_s25, %s2449_s26  }
   0xa   :  { %s65_s13 = sshll.u32 %s2451_s12, 4  ;;  %s2452_s2 = smov 512   ;;  %s66_s13 = int_to_ptr.vmem [resolvable:$true] %s65_s13 }
   0xb   :  { %s2453_s14 = smov 32  }
   0xc   :  { %71 = dma.hbm_to_vmem [thread:$0]  %s64_s6, 8192, %s66_s13, [#allocation6], %s2452_s2, %s2452_s2, %s2453_s14  }
   0xd   :  { %2439 = dma.done.wait [#allocation3], 8192  }
   0xe   :  { %2440 = vsyncadd [#allocation3], 4294959104 }
   0xf   :  { %2441 = dma.done.wait [#allocation6], 9216  }
  0x10   :  { %2442 = vsyncadd [#allocation6], 4294958080  ;;  %v2156_v0 = vld [vmem:[#allocation2 + $0x38] sm:$0xff]  ;;  %v2155_v4 = vld [vmem:[#allocation2 + $0x30] sm:$0xff]  ;;  %s2455_s13 = smov 256   ;;  %s2456_s2 = smov 16  }
  0x11   :  { %v2164_v1 = vld [vmem:[#allocation2 + $0x78] sm:$0xff]  ;;  %626 = vmatpush.bf16.msra.mxu0 %v2156_v0  ;;  %v2163_v5 = vld [vmem:[#allocation2 + $0x70] sm:$0xff]  ;;  %v2154_v8 = vld [vmem:[#allocation2 + $0x28] sm:$0xff]  ;;  %s1522_s17 = sshll.u32 %s2732_s11, 4  ;;  %s2458_s18 = smov 1024   ;;  %s1523_s17 = int_to_ptr.hbm [resolvable:$true] %s1522_s17 }
  0x12   :  { %v2172_v2 = vld [vmem:[#allocation2 + $0xb8] sm:$0xff]  ;;  %640 = vmatpush.bf16.msra.mxu1 %v2164_v1  ;;  %v2171_v6 = vld [vmem:[#allocation2 + $0xb0] sm:$0xff]  ;;  %v2162_v9 = vld [vmem:[#allocation2 + $0x68] sm:$0xff] }
  0x13   :  { %v2180_v3 = vld [vmem:[#allocation2 + $0xf8] sm:$0xff]  ;;  %654 = vmatpush.bf16.msra.mxu2 %v2172_v2  ;;  %v2179_v7 = vld [vmem:[#allocation2 + $0xf0] sm:$0xff]  ;;  %v2170_v10 = vld [vmem:[#allocation2 + $0xa8] sm:$0xff] }
  0x14   :  { %668 = vmatpush.bf16.msra.mxu3 %v2180_v3  ;;  %v2178_v11 = vld [vmem:[#allocation2 + $0xe8] sm:$0xff]  ;;  %v2153_v12 = vld [vmem:[#allocation2 + $0x20] sm:$0xff]  ;;  %v2152_v16 = vld [vmem:[#allocation2 + $0x18] sm:$0xff] }
  0x15   :  { %627 = vmatpush.bf16.msra.mxu0 %v2155_v4  ;;  %v2161_v13 = vld [vmem:[#allocation2 + $0x60] sm:$0xff]  ;;  %v2160_v17 = vld [vmem:[#allocation2 + $0x58] sm:$0xff]  ;;  %v2151_v20 = vld [vmem:[#allocation2 + $0x10] sm:$0xff] }
  0x16   :  { %641 = vmatpush.bf16.msra.mxu1 %v2163_v5  ;;  %v2169_v14 = vld [vmem:[#allocation2 + $0xa0] sm:$0xff]  ;;  %v2168_v18 = vld [vmem:[#allocation2 + $0x98] sm:$0xff]  ;;  %v2159_v21 = vld [vmem:[#allocation2 + $0x50] sm:$0xff] }
  0x17   :  { %655 = vmatpush.bf16.msra.mxu2 %v2171_v6  ;;  %v2177_v15 = vld [vmem:[#allocation2 + $0xe0] sm:$0xff]  ;;  %v2176_v19 = vld [vmem:[#allocation2 + $0xd8] sm:$0xff]  ;;  %v2167_v22 = vld [vmem:[#allocation2 + $0x90] sm:$0xff] }
  0x18   :  { %669 = vmatpush.bf16.msra.mxu3 %v2179_v7  ;;  %v2175_v23 = vld [vmem:[#allocation2 + $0xd0] sm:$0xff]  ;;  %v2150_v24 = vld [vmem:[#allocation2 + $0x8] sm:$0xff]  ;;  %v2149_v28 = vld [vmem:[#allocation2] sm:$0xff] }
  0x19   :  { %628 = vmatpush.bf16.msra.mxu0 %v2154_v8  ;;  %v2158_v25 = vld [vmem:[#allocation2 + $0x48] sm:$0xff]  ;;  %v2157_v29 = vld [vmem:[#allocation2 + $0x40] sm:$0xff]  ;;  %v2188_v32 = vld [vmem:[#allocation2 + $0x138] sm:$0xff] }
  0x1a   :  { %642 = vmatpush.bf16.msra.mxu1 %v2162_v9  ;;  %v2166_v26 = vld [vmem:[#allocation2 + $0x88] sm:$0xff]  ;;  %v2165_v30 = vld [vmem:[#allocation2 + $0x80] sm:$0xff]  ;;  %v2196_v33 = vld [vmem:[#allocation2 + $0x178] sm:$0xff] }
  0x1b   :  { %656 = vmatpush.bf16.msra.mxu2 %v2170_v10  ;;  %v2174_v27 = vld [vmem:[#allocation2 + $0xc8] sm:$0xff]  ;;  %v2173_v31 = vld [vmem:[#allocation2 + $0xc0] sm:$0xff]  ;;  %v88_v34 = vld [vmem:[%s2721_s0 + $0x10] sm:$0xff] }
  0x1c   :  { %670 = vmatpush.bf16.msra.mxu3 %v2178_v11  ;;  %v96_v35 = vld [vmem:[%s2721_s0 + $0x50] sm:$0xff]  ;;  %v86_v36 = vld [vmem:[%s2721_s0] sm:$0xff]  ;;  %v89_v38 = vld [vmem:[%s2721_s0 + $0x18] sm:$0xff] }
  0x1d   :  { %629 = vmatpush.bf16.msra.mxu0 %v2153_v12  ;;  %v94_v37 = vld [vmem:[%s2721_s0 + $0x40] sm:$0xff]  ;;  %v97_v39 = vld [vmem:[%s2721_s0 + $0x58] sm:$0xff]  ;;  %v87_v40 = vld [vmem:[%s2721_s0 + $0x8] sm:$0xff]  ;;  %v104_v44 = vpack.c.bf16 %v96_v35, %v88_v34 }
  0x1e   :  { %643 = vmatpush.bf16.msra.mxu1 %v2161_v13  ;;  %v95_v41 = vld [vmem:[%s2721_s0 + $0x48] sm:$0xff]  ;;  %v2204_v42 = vld [vmem:[#allocation2 + $0x1b8] sm:$0xff]  ;;  %v102_v45 = vpack.c.bf16 %v94_v37, %v86_v36  ;;  %v105_v46 = vpack.c.bf16 %v97_v39, %v89_v38  ;;  %v2187_v48 = vld [vmem:[#allocation2 + $0x130] sm:$0xff] }
  0x1f   :  { %657 = vmatpush.bf16.msra.mxu2 %v2169_v14  ;;  %v2212_v43 = vld [vmem:[#allocation2 + $0x1f8] sm:$0xff]  ;;  %v103_v47 = vpack.c.bf16 %v95_v41, %v87_v40  ;;  %v2195_v49 = vld [vmem:[#allocation2 + $0x170] sm:$0xff]  ;;  %v2186_v52 = vld [vmem:[#allocation2 + $0x128] sm:$0xff] }
  0x20   :  { %671 = vmatpush.bf16.msra.mxu3 %v2177_v15  ;;  %v2203_v50 = vld [vmem:[#allocation2 + $0x1b0] sm:$0xff]  ;;  %v2194_v53 = vld [vmem:[#allocation2 + $0x168] sm:$0xff]  ;;  %v2185_v56 = vld [vmem:[#allocation2 + $0x120] sm:$0xff] }
  0x21   :  { %630 = vmatpush.bf16.msra.mxu0 %v2152_v16  ;;  %v2211_v51 = vld [vmem:[#allocation2 + $0x1f0] sm:$0xff]  ;;  %v2202_v54 = vld [vmem:[#allocation2 + $0x1a8] sm:$0xff]  ;;  %v2193_v57 = vld [vmem:[#allocation2 + $0x160] sm:$0xff] }
  0x22   :  { %644 = vmatpush.bf16.msra.mxu1 %v2160_v17  ;;  %v2210_v55 = vld [vmem:[#allocation2 + $0x1e8] sm:$0xff]  ;;  %v2201_v58 = vld [vmem:[#allocation2 + $0x1a0] sm:$0xff]  ;;  %v2184_v60 = vld [vmem:[#allocation2 + $0x118] sm:$0xff] }
  0x23   :  { %658 = vmatpush.bf16.msra.mxu2 %v2168_v18  ;;  %v2209_v59 = vld [vmem:[#allocation2 + $0x1e0] sm:$0xff]  ;;  %v2192_v61 = vld [vmem:[#allocation2 + $0x158] sm:$0xff]  ;;  %v2183_v0 = vld [vmem:[#allocation2 + $0x110] sm:$0xff] }
  0x24   :  { %672 = vmatpush.bf16.msra.mxu3 %v2176_v19  ;;  %v2200_v62 = vld [vmem:[#allocation2 + $0x198] sm:$0xff]  ;;  %v2191_v1 = vld [vmem:[#allocation2 + $0x150] sm:$0xff]  ;;  %v2182_v4 = vld [vmem:[#allocation2 + $0x108] sm:$0xff] }
  0x25   :  { %631 = vmatpush.bf16.msra.mxu0 %v2151_v20  ;;  %v2208_v63 = vld [vmem:[#allocation2 + $0x1d8] sm:$0xff]  ;;  %v2199_v2 = vld [vmem:[#allocation2 + $0x190] sm:$0xff]  ;;  %v2190_v5 = vld [vmem:[#allocation2 + $0x148] sm:$0xff] }
  0x26   :  { %645 = vmatpush.bf16.msra.mxu1 %v2159_v21  ;;  %v2207_v3 = vld [vmem:[#allocation2 + $0x1d0] sm:$0xff]  ;;  %v2198_v6 = vld [vmem:[#allocation2 + $0x188] sm:$0xff]  ;;  %v2181_v8 = vld [vmem:[#allocation2 + $0x100] sm:$0xff] }
  0x27   :  { %659 = vmatpush.bf16.msra.mxu2 %v2167_v22  ;;  %v2206_v7 = vld [vmem:[#allocation2 + $0x1c8] sm:$0xff]  ;;  %v2189_v9 = vld [vmem:[#allocation2 + $0x140] sm:$0xff]  ;;  %v92_v16 = vld [vmem:[%s2721_s0 + $0x30] sm:$0xff] }
  0x28   :  { %673 = vmatpush.bf16.msra.mxu3 %v2175_v23  ;;  %v2197_v10 = vld [vmem:[#allocation2 + $0x180] sm:$0xff]  ;;  %v91_v14 = vld [vmem:[%s2721_s0 + $0x28] sm:$0xff]  ;;  %v100_v17 = vld [vmem:[%s2721_s0 + $0x70] sm:$0xff] }
  0x29   :  { %632 = vmatpush.bf16.msra.mxu0 %v2150_v24  ;;  %v2205_v11 = vld [vmem:[#allocation2 + $0x1c0] sm:$0xff]  ;;  %v99_v15 = vld [vmem:[%s2721_s0 + $0x68] sm:$0xff]  ;;  %v93_v18 = vld [vmem:[%s2721_s0 + $0x38] sm:$0xff]  ;;  %v108_v22 = vpack.c.bf16 %v100_v17, %v92_v16 }
  0x2a   :  { %646 = vmatpush.bf16.msra.mxu1 %v2158_v25  ;;  %v90_v12 = vld [vmem:[%s2721_s0 + $0x20] sm:$0xff]  ;;  %v101_v19 = vld [vmem:[%s2721_s0 + $0x78] sm:$0xff]  ;;  %v107_v21 = vpack.c.bf16 %v99_v15, %v91_v14  ;;  %v1855_v24 = vld [vmem:[%s2725_s4 + $0x70] sm:$0xf] }
  0x2b   :  { %660 = vmatpush.bf16.msra.mxu2 %v2166_v26  ;;  %v98_v13 = vld [vmem:[%s2721_s0 + $0x60] sm:$0xff]  ;;  %v109_v23 = vpack.c.bf16 %v101_v19, %v93_v18  ;;  %v2228_v25 = vld [vmem:[%s2725_s4 + $0x74] sm:$0xf0]  ;;  %v2227_v26 = vld [vmem:[%s2725_s4 + $0x74] sm:$0xf]  ;;  %s2454_s0 = smov [#allocation8]  }
  0x2c   :  { %674 = vmatpush.bf16.msra.mxu3 %v2174_v27  ;;  %v106_v20 = vpack.c.bf16 %v98_v13, %v90_v12  ;;  %v1856_v27 = vor.u32 %v2228_v25, %v1855_v24  ;;  %v1839_v36 = vld [vmem:[%s2725_s4 + $0x50] sm:$0xf]  ;;  %v2224_v37 = vld [vmem:[%s2725_s4 + $0x54] sm:$0xf0]  ;;  %v2223_v38 = vld [vmem:[%s2725_s4 + $0x54] sm:$0xf] }
  0x2d   :  { %633 = vmatpush.bf16.msra.mxu0 %v2149_v28  ;;  %v1857_v28 = vld [vmem:[%s2725_s4 + $0x78] sm:$0xf0]  ;;  %v1840_v39 = vor.u32 %v2224_v37, %v1839_v36  ;;  %s1507_s30 = sshll.u32 %s2454_s0, 4  ;;  %s1508_s30 = int_to_ptr.vmem [resolvable:$true] %s1507_s30 }
  0x2e   :  { %647 = vmatpush.bf16.msra.mxu1 %v2157_v29  ;;  %v1847_v29 = vld [vmem:[%s2725_s4 + $0x60] sm:$0xf]  ;;  %v1841_v40 = vld [vmem:[%s2725_s4 + $0x58] sm:$0xf0] }
  0x2f   :  { %661 = vmatpush.bf16.msra.mxu2 %v2165_v30  ;;  %v2226_v30 = vld [vmem:[%s2725_s4 + $0x64] sm:$0xf0]  ;;  %v1844_v41 = vor.u32 %v2223_v38, %v1841_v40  ;;  %v2236_v15 = vld [vmem:[#allocation5 + $0x38] sm:$0xff] }
  0x30   :  { %675 = vmatpush.bf16.msra.mxu3 %v2173_v31  ;;  %634 = vmatmul.bf16.vlgmr.msra.gmra.mxu0 %v102_v45  ;;  %v1860_v31 = vor.u32 %v2227_v26, %v1857_v28  ;;  %v1848_v34 = vor.u32 %v2226_v30, %v1847_v29 }
  0x31   :  { %682 = vmatpush.bf16.msrb.mxu0 %v2188_v32  ;;  %648 = vmatmul.bf16.vlgmr.msra.gmra.mxu1 %v103_v47  ;;  %v2225_v32 = vld [vmem:[%s2725_s4 + $0x64] sm:$0xf] }
  0x32   :  { %696 = vmatpush.bf16.msrb.mxu1 %v2196_v33  ;;  %662 = vmatmul.bf16.vlgmr.msra.gmra.mxu2 %v104_v44  ;;  %v1849_v33 = vld [vmem:[%s2725_s4 + $0x68] sm:$0xf0]  ;;  %v2221_v44 = vld [vmem:[%s2725_s4 + $0x44] sm:$0xf] }
  0x33   :  { %710 = vmatpush.bf16.msrb.mxu2 %v2204_v42  ;;  %676 = vmatmul.bf16.vlgmr.msra.gmra.mxu3 %v105_v46  ;;  %v1852_v35 = vor.u32 %v2225_v32, %v1849_v33  ;;  %v1831_v42 = vld [vmem:[%s2725_s4 + $0x40] sm:$0xf]  ;;  %v1833_v46 = vld [vmem:[%s2725_s4 + $0x48] sm:$0xf0] }
  0x34   :  { %724 = vmatpush.bf16.msrb.mxu3 %v2212_v43  ;;  %v2222_v43 = vld [vmem:[%s2725_s4 + $0x44] sm:$0xf0]  ;;  %v1836_v47 = vor.u32 %v2221_v44, %v1833_v46 }
  0x35   :  { %683 = vmatpush.bf16.msrb.mxu0 %v2187_v48  ;;  %v1832_v45 = vor.u32 %v2222_v43, %v1831_v42  ;;  %v1823_v48 = vld [vmem:[%s2725_s4 + $0x30] sm:$0xf]  ;;  %v2234_v46 = vld [vmem:[#allocation5 + $0x28] sm:$0xff] }
  0x36   :  { %697 = vmatpush.bf16.msrb.mxu1 %v2195_v49  ;;  %v2220_v49 = vld [vmem:[%s2725_s4 + $0x34] sm:$0xf0] }
  0x37   :  { %711 = vmatpush.bf16.msrb.mxu2 %v2203_v50  ;;  %v2219_v50 = vld [vmem:[%s2725_s4 + $0x34] sm:$0xf] }
  0x38   :  { %725 = vmatpush.bf16.msrb.mxu3 %v2211_v51  ;;  %v1824_v51 = vor.u32 %v2220_v49, %v1823_v48  ;;  %v2232_v48 = vld [vmem:[#allocation5 + $0x18] sm:$0xff]  ;;  %v2231_v49 = vld [vmem:[#allocation5 + $0x10] sm:$0xff] }
  0x39   :  { %684 = vmatpush.bf16.msrb.mxu0 %v2186_v52  ;;  %v1825_v52 = vld [vmem:[%s2725_s4 + $0x38] sm:$0xf0] }
  0x3a   :  { %698 = vmatpush.bf16.msrb.mxu1 %v2194_v53  ;;  %v1828_v53 = vor.u32 %v2219_v50, %v1825_v52  ;;  %v2230_v50 = vld [vmem:[#allocation5 + $0x8] sm:$0xff]  ;;  %v2682_v52 = vld [vmem:[%s2726_s5] sm:$0x3] }
  0x3b   :  { %712 = vmatpush.bf16.msrb.mxu2 %v2202_v54  ;;  %v1815_v54 = vld [vmem:[%s2725_s4 + $0x20] sm:$0xf] }
  0x3c   :  { %726 = vmatpush.bf16.msrb.mxu3 %v2210_v55  ;;  %v2218_v55 = vld [vmem:[%s2725_s4 + $0x24] sm:$0xf0] }
  0x3d   :  { %685 = vmatpush.bf16.msrb.mxu0 %v2185_v56  ;;  %v2217_v56 = vld [vmem:[%s2725_s4 + $0x24] sm:$0xf] }
  0x3e   :  { %699 = vmatpush.bf16.msrb.mxu1 %v2193_v57  ;;  %v1816_v57 = vor.u32 %v2218_v55, %v1815_v54  ;;  %v760_v54 = vperm.slane %v2682_v52, 1  ;;  %v2119_v55 = vld [vmem:[#allocation7 + $0x1c0] sm:$0xf] }
  0x3f   :  { %713 = vmatpush.bf16.msrb.mxu2 %v2201_v58  ;;  %v1817_v58 = vld [vmem:[%s2725_s4 + $0x28] sm:$0xf0] }
  0x40   :  { %727 = vmatpush.bf16.msrb.mxu3 %v2209_v59  ;;  %v1820_v59 = vor.u32 %v2217_v56, %v1817_v58  ;;  %v2297_v56 = vld [vmem:[#allocation7 + $0x1dc] sm:$0xf0] }
  0x41   :  { %686 = vmatpush.bf16.msrb.mxu0 %v2184_v60  ;;  %v2120_v58 = vor.u32 %v2297_v56, %v2119_v55  ;;  %v1993_v55 = vld [vmem:[#allocation7 + $0xe0] sm:$0xf0]  ;;  %v1999_v56 = vld [vmem:[#allocation7 + $0xc8] sm:$0xf] }
  0x42   :  { %700 = vmatpush.bf16.msrb.mxu1 %v2192_v61  ;;  %v1807_v61 = vld [vmem:[%s2725_s4 + $0x10] sm:$0xf] }
  0x43   :  { %714 = vmatpush.bf16.msrb.mxu2 %v2200_v62  ;;  %v2216_v62 = vld [vmem:[%s2725_s4 + $0x14] sm:$0xf0] }
  0x44   :  { %728 = vmatpush.bf16.msrb.mxu3 %v2208_v63  ;;  %v2215_v63 = vld [vmem:[%s2725_s4 + $0x14] sm:$0xf] }
  0x45   :  { %687 = vmatpush.bf16.msrb.mxu0 %v2183_v0  ;;  %v1808_v0 = vor.u32 %v2216_v62, %v1807_v61  ;;  %v2298_v61 = vld [vmem:[#allocation7 + $0x1e4] sm:$0xf0] }
  0x46   :  { %701 = vmatpush.bf16.msrb.mxu1 %v2191_v1  ;;  %v1809_v1 = vld [vmem:[%s2725_s4 + $0x18] sm:$0xf0] }
  0x47   :  { %715 = vmatpush.bf16.msrb.mxu2 %v2199_v2  ;;  %v1812_v2 = vor.u32 %v2215_v63, %v1809_v1  ;;  %v2129_v1 = vld [vmem:[#allocation7 + $0x1e8] sm:$0xf0] }
  0x48   :  { %729 = vmatpush.bf16.msrb.mxu3 %v2207_v3 }
  0x49   :  { %688 = vmatpush.bf16.msrb.mxu0 %v2182_v4  ;;  %v1799_v4 = vld [vmem:[%s2725_s4] sm:$0xf] }
  0x4a   :  { %702 = vmatpush.bf16.msrb.mxu1 %v2190_v5  ;;  %v2214_v5 = vld [vmem:[%s2725_s4 + $0x4] sm:$0xf0] }
  0x4b   :  { %716 = vmatpush.bf16.msrb.mxu2 %v2198_v6  ;;  %v2213_v6 = vld [vmem:[%s2725_s4 + $0x4] sm:$0xf] }
  0x4c   :  { %730 = vmatpush.bf16.msrb.mxu3 %v2206_v7  ;;  %v1800_v7 = vor.u32 %v2214_v5, %v1799_v4  ;;  %v2289_v4 = vld [vmem:[#allocation7 + $0x19c] sm:$0xf0]  ;;  %v2285_v5 = vld [vmem:[#allocation7 + $0x184] sm:$0xf] }
  0x4d   :  { %689 = vmatpush.bf16.msrb.mxu0 %v2181_v8  ;;  %v1801_v8 = vld [vmem:[%s2725_s4 + $0x8] sm:$0xf0] }
  0x4e   :  { %703 = vmatpush.bf16.msrb.mxu1 %v2189_v9  ;;  %v2313_v9 = vld [vmem:[%s2724_s3] ss:$0 sm:$0xff] }
  0x4f   :  { %717 = vmatpush.bf16.msrb.mxu2 %v2197_v10  ;;  %v1804_v10 = vor.u32 %v2213_v6, %v1801_v8  ;;  %v2089_v6 = vld [vmem:[#allocation7 + $0x1a0] sm:$0xf0] }
  0x50   :  { %731 = vmatpush.bf16.msrb.mxu3 %v2205_v11  ;;  %690 = vmatmul.bf16.vlgmr.msrb.gmra.mxu0 %v106_v20 }
  0x51   :  { %704 = vmatmul.bf16.vlgmr.msrb.gmra.mxu1 %v107_v21  ;;  %843 = vmatpush.bf16.msra.mxu0 %v1856_v27 }
  0x52   :  { %718 = vmatmul.bf16.vlgmr.msrb.gmra.mxu2 %v108_v22  ;;  %857 = vmatpush.bf16.msra.mxu1 %v1860_v31 }
  0x53   :  { %732 = vmatmul.bf16.vlgmr.msrb.gmra.mxu3 %v109_v23  ;;  %956 = vmatpush.bf16.msra.mxu2 %v2236_v15 }
  0x54   :  { %1375 = vmatpush.bf16.msra.mxu3 %v2120_v58  ;;  %v2262_v58 = vld [vmem:[#allocation7 + $0xcc] sm:$0xf] }
  0x55   :  { %844 = vmatpush.bf16.msra.mxu0 %v1848_v34 }
  0x56   :  { %858 = vmatpush.bf16.msra.mxu1 %v1852_v35 }
  0x59   :  { %845 = vmatpush.bf16.msra.mxu0 %v1840_v39 }
  0x5a   :  { %859 = vmatpush.bf16.msra.mxu1 %v1844_v41 }
  0x5d   :  { %846 = vmatpush.bf16.msra.mxu0 %v1832_v45  ;;  %v2235_v45 = vld [vmem:[#allocation5 + $0x30] sm:$0xff] }
  0x5e   :  { %860 = vmatpush.bf16.msra.mxu1 %v1836_v47  ;;  %957 = vmatpush.bf16.msra.mxu2 %v2235_v45  ;;  %v2233_v47 = vld [vmem:[#allocation5 + $0x20] sm:$0xff] }
  0x61   :  { %847 = vmatpush.bf16.msra.mxu0 %v1824_v51  ;;  %v2229_v51 = vld [vmem:[#allocation5] sm:$0xff] }
  0x62   :  { %861 = vmatpush.bf16.msra.mxu1 %v1828_v53  ;;  %958 = vmatpush.bf16.msra.mxu2 %v2234_v46  ;;  %v759_v53 = vperm.slane %v2682_v52, 0  ;;  %v1991_v46 = vld [vmem:[#allocation7 + $0xc0] sm:$0xf] }
  0x65   :  { %848 = vmatpush.bf16.msra.mxu0 %v1816_v57  ;;  %v2293_v57 = vld [vmem:[#allocation7 + $0x1c4] sm:$0xf] }
  0x66   :  { %862 = vmatpush.bf16.msra.mxu1 %v1820_v59  ;;  %959 = vmatpush.bf16.msra.mxu2 %v2233_v47  ;;  %v2121_v59 = vld [vmem:[#allocation7 + $0x1e0] sm:$0xf0]  ;;  %v2265_v47 = vld [vmem:[#allocation7 + $0xdc] sm:$0xf0] }
  0x67   :  { %v2124_v62 = vor.u32 %v2293_v57, %v2121_v59  ;;  %v2266_v57 = vld [vmem:[#allocation7 + $0xe4] sm:$0xf0]  ;;  %v2001_v59 = vld [vmem:[#allocation7 + $0xe8] sm:$0xf0] }
  0x69   :  { %849 = vmatpush.bf16.msra.mxu0 %v1808_v0  ;;  %v2294_v0 = vld [vmem:[#allocation7 + $0x1cc] sm:$0xf] }
  0x6a   :  { %863 = vmatpush.bf16.msra.mxu1 %v1812_v2  ;;  %960 = vmatpush.bf16.msra.mxu2 %v2232_v48  ;;  %v2087_v2 = vld [vmem:[#allocation7 + $0x180] sm:$0xf]  ;;  %v2261_v48 = vld [vmem:[#allocation7 + $0xc4] sm:$0xf] }
  0x6b   :  { %v1996_v52 = vor.u32 %v2261_v48, %v1993_v55 }
  0x6d   :  { %850 = vmatpush.bf16.msra.mxu0 %v1800_v7 }
  0x6e   :  { %864 = vmatpush.bf16.msra.mxu1 %v1804_v10  ;;  %961 = vmatpush.bf16.msra.mxu2 %v2231_v49  ;;  %v2092_v10 = vor.u32 %v2285_v5, %v2089_v6  ;;  %v2254_v5 = vld [vmem:[#allocation7 + $0x8c] sm:$0xf] }
  0x6f   :  { %v1969_v6 = vld [vmem:[#allocation7 + $0xa8] sm:$0xf0] }
  0x71   :  { %1389 = vmatpush.bf16.msrb.mxu0 %v2124_v62  ;;  %v1959_v62 = vld [vmem:[#allocation7 + $0x80] sm:$0xf] }
  0x72   :  { %962 = vmatpush.bf16.msra.mxu2 %v2230_v50 }
  0x75   :  { %1390 = vmatpush.bf16.msrb.mxu0 %v2092_v10 }
  0x76   :  { %963 = vmatpush.bf16.msra.mxu2 %v2229_v51 }
  0xad   :  { %v635_v60 = vpop.f32.mrf.mxu0 }
  0xae   :  { %v649_v3 = vpop.f32.mrf.mxu1  ;;  %v636_v13 = vadd.f32 %v2313_v9, %v635_v60  ;;  %v2127_v60 = vld [vmem:[#allocation7 + $0x1c8] sm:$0xf] }
  0xaf   :  { %v2128_v63 = vor.u32 %v2298_v61, %v2127_v60  ;;  %v1992_v61 = vor.u32 %v2265_v47, %v1991_v46  ;;  %v2299_v46 = vld [vmem:[#allocation7 + $0x1ec] sm:$0xf0]  ;;  %v2295_v47 = vld [vmem:[#allocation7 + $0x1d4] sm:$0xf] }
  0xb0   :  { %v650_v17 = vadd.f32 %v649_v3, %v636_v13  ;;  %v2132_v3 = vor.u32 %v2294_v0, %v2129_v1  ;;  %v2286_v13 = vld [vmem:[#allocation7 + $0x18c] sm:$0xf]  ;;  %v1961_v0 = vld [vmem:[#allocation7 + $0xa0] sm:$0xf0] }
  0xb1   :  { %1403 = vmatpush.bf16.msrb.mxu1 %v2128_v63  ;;  %v2257_v63 = vld [vmem:[#allocation7 + $0x9c] sm:$0xf0] }
  0xb2   :  { %1417 = vmatpush.bf16.msrb.mxu2 %v2132_v3  ;;  %v1967_v3 = vld [vmem:[#allocation7 + $0x88] sm:$0xf] }
  0xb5   :  { %v663_v11 = vpop.f32.mrf.mxu2  ;;  %v637_v14 = vpop.f32.mrf.mxu0 }
  0xb6   :  { %v677_v12 = vpop.f32.mrf.mxu3  ;;  %v651_v16 = vpop.f32.mrf.mxu1  ;;  %v638_v18 = vadd.f32 %v2313_v9, %v637_v14  ;;  %v664_v21 = vadd.f32 %v663_v11, %v650_v17  ;;  %v2088_v9 = vor.u32 %v2289_v4, %v2087_v2  ;;  %v2095_v11 = vld [vmem:[#allocation7 + $0x188] sm:$0xf]  ;;  %v2097_v17 = vld [vmem:[#allocation7 + $0x1a8] sm:$0xf0]  ;;  %v2004_v2 = vor.u32 %v2262_v58, %v2001_v59  ;;  %v2103_v59 = vld [vmem:[#allocation7 + $0x190] sm:$0xf] }
  0xb7   :  { %v2258_v4 = vld [vmem:[#allocation7 + $0xa4] sm:$0xf0] }
  0xb8   :  { %v652_v22 = vadd.f32 %v651_v16, %v638_v18  ;;  %v678_v25 = vadd.f32 %v677_v12, %v664_v21  ;;  %v2290_v12 = vld [vmem:[#allocation7 + $0x1a4] sm:$0xf0]  ;;  %v2055_v18 = vld [vmem:[#allocation7 + $0x140] sm:$0xf]  ;;  %v2277_v21 = vld [vmem:[#allocation7 + $0x144] sm:$0xf]  ;;  %1376 = vmatpush.bf16.msra.mxu3 %v2088_v9  ;;  %v1968_v10 = vor.u32 %v2258_v4, %v1967_v3 }
  0xb9   :  { %v2096_v16 = vor.u32 %v2290_v12, %v2095_v11  ;;  %v1927_v11 = vld [vmem:[#allocation7 + $0x40] sm:$0xf]  ;;  %v2071_v4 = vld [vmem:[#allocation7 + $0x150] sm:$0xf] }
  0xba   :  { %v2249_v12 = vld [vmem:[#allocation7 + $0x5c] sm:$0xf0] }
  0xbb   :  { %1404 = vmatpush.bf16.msrb.mxu1 %v2096_v16  ;;  %v1972_v16 = vor.u32 %v2254_v5, %v1969_v6  ;;  %v2283_v5 = vld [vmem:[#allocation7 + $0x16c] sm:$0xf0]  ;;  %v2279_v6 = vld [vmem:[#allocation7 + $0x154] sm:$0xf] }
  0xbd   :  { %v665_v19 = vpop.f32.mrf.mxu2 }
  0xbe   :  { %v679_v20 = vpop.f32.mrf.mxu3  ;;  %v666_v26 = vadd.f32 %v665_v19, %v652_v22  ;;  %v2281_v19 = vld [vmem:[#allocation7 + $0x15c] sm:$0xf0]  ;;  %v2057_v22 = vld [vmem:[#allocation7 + $0x160] sm:$0xf0] }
  0xc0   :  { %v680_v30 = vadd.f32 %v679_v20, %v666_v26  ;;  %v2100_v20 = vor.u32 %v2286_v13, %v2097_v17  ;;  %v2282_v26 = vld [vmem:[#allocation7 + $0x164] sm:$0xf0]  ;;  %v2245_v13 = vld [vmem:[#allocation7 + $0x44] sm:$0xf] }
  0xc1   :  { %v1929_v17 = vld [vmem:[#allocation7 + $0x60] sm:$0xf0] }
  0xc2   :  { %1418 = vmatpush.bf16.msrb.mxu2 %v2100_v20  ;;  %v2246_v20 = vld [vmem:[#allocation7 + $0x4c] sm:$0xf] }
  0xcd   :  { %v691_v23 = vpop.f32.mrf.mxu0 }
  0xce   :  { %v705_v24 = vpop.f32.mrf.mxu1  ;;  %v692_v27 = vadd.f32 %v691_v23, %v678_v25  ;;  %v2063_v23 = vld [vmem:[#allocation7 + $0x148] sm:$0xf]  ;;  %v2056_v25 = vor.u32 %v2281_v19, %v2055_v18 }
  0xcf   :  { %v1935_v18 = vld [vmem:[#allocation7 + $0x48] sm:$0xf] }
  0xd0   :  { %v706_v32 = vadd.f32 %v705_v24, %v692_v27  ;;  %v2278_v27 = vld [vmem:[#allocation7 + $0x14c] sm:$0xf]  ;;  %1377 = vmatpush.bf16.msra.mxu3 %v2056_v25  ;;  %v2250_v19 = vld [vmem:[#allocation7 + $0x64] sm:$0xf0]  ;;  %v1932_v25 = vor.u32 %v2245_v13, %v1929_v17  ;;  %v2280_v13 = vld [vmem:[#allocation7 + $0x15c] sm:$0xf] }
  0xd1   :  { %v2039_v17 = vld [vmem:[#allocation7 + $0x110] sm:$0xf] }
  0xd5   :  { %v719_v28 = vpop.f32.mrf.mxu2  ;;  %v693_v31 = vpop.f32.mrf.mxu0 }
  0xd6   :  { %v733_v29 = vpop.f32.mrf.mxu3  ;;  %v694_v33 = vadd.f32 %v693_v31, %v680_v30  ;;  %v720_v34 = vadd.f32 %v719_v28, %v706_v32  ;;  %v707_v35 = vpop.f32.mrf.mxu1  ;;  %v2060_v28 = vor.u32 %v2277_v21, %v2057_v22  ;;  %v2065_v30 = vld [vmem:[#allocation7 + $0x168] sm:$0xf0]  ;;  %v2023_v31 = vld [vmem:[#allocation7 + $0x100] sm:$0xf] }
  0xd7   :  { %v2068_v32 = vor.u32 %v2278_v27, %v2065_v30  ;;  %v1937_v21 = vld [vmem:[#allocation7 + $0x68] sm:$0xf0]  ;;  %v1895_v27 = vld [vmem:[#allocation7] sm:$0xf] }
  0xd8   :  { %v708_v36 = vadd.f32 %v707_v35, %v694_v33  ;;  %v734_v38 = vadd.f32 %v733_v29, %v720_v34  ;;  %v2064_v29 = vor.u32 %v2282_v26, %v2063_v23  ;;  %v2273_v33 = vld [vmem:[#allocation7 + $0x11c] sm:$0xf0]  ;;  %v2269_v34 = vld [vmem:[#allocation7 + $0x104] sm:$0xf]  ;;  %1391 = vmatpush.bf16.msrb.mxu0 %v2060_v28  ;;  %v882_v22 = vld [vmem:[%s2722_s1 + $0x8] sm:$0xff]  ;;  %v1928_v23 = vor.u32 %v2249_v12, %v1927_v11 }
  0xd9   :  { %v2025_v35 = vld [vmem:[#allocation7 + $0x120] sm:$0xf0]  ;;  %1419 = vmatpush.bf16.msrb.mxu2 %v2068_v32  ;;  %v1936_v26 = vor.u32 %v2250_v19, %v1935_v18  ;;  %v2241_v28 = vld [vmem:[#allocation7 + $0x1c] sm:$0xf0]  ;;  %v1940_v30 = vor.u32 %v2246_v20, %v1937_v21  ;;  %v2275_v18 = vld [vmem:[#allocation7 + $0x12c] sm:$0xf0] }
  0xda   :  { %v738_v42 = vmax.f32 %v734_v38, 0.0  ;;  %1405 = vmatpush.bf16.msrb.mxu1 %v2064_v29  ;;  %v1897_v32 = vld [vmem:[#allocation7 + $0x20] sm:$0xf0]  ;;  %v2271_v19 = vld [vmem:[#allocation7 + $0x114] sm:$0xf]  ;;  %v2040_v20 = vor.u32 %v2275_v18, %v2039_v17 }
  0xdb   :  { %v2041_v21 = vld [vmem:[#allocation7 + $0x130] sm:$0xf0] }
  0xdd   :  { %v721_v37 = vpop.f32.mrf.mxu2 }
  0xde   :  { %v722_v39 = vadd.f32 %v721_v37, %v708_v36  ;;  %v735_v40 = vpop.f32.mrf.mxu3  ;;  %v2031_v36 = vld [vmem:[#allocation7 + $0x108] sm:$0xf] }
  0xdf   :  { %v2274_v37 = vld [vmem:[#allocation7 + $0x124] sm:$0xf0] }
  0xe0   :  { %v736_v41 = vadd.f32 %v735_v40, %v722_v39  ;;  %v2024_v39 = vor.u32 %v2273_v33, %v2023_v31  ;;  %v2270_v40 = vld [vmem:[#allocation7 + $0x10c] sm:$0xf]  ;;  %v2032_v45 = vor.u32 %v2274_v37, %v2031_v36  ;;  %v2237_v31 = vld [vmem:[#allocation7 + $0x4] sm:$0xf]  ;;  %v1903_v33 = vld [vmem:[#allocation7 + $0x8] sm:$0xf] }
  0xe1   :  { %v2238_v36 = vld [vmem:[#allocation7 + $0xc] sm:$0xf] }
  0xe2   :  { %v739_v43 = vmax.f32 %v736_v41, 0.0  ;;  %v2033_v41 = vld [vmem:[#allocation7 + $0x128] sm:$0xf0]  ;;  %1378 = vmatpush.bf16.msra.mxu3 %v2024_v39  ;;  %1406 = vmatpush.bf16.msrb.mxu1 %v2032_v45  ;;  %v2135_v45 = vld [vmem:[#allocation7 + $0x1d0] sm:$0xf] }
  0xe3   :  { %v2036_v51 = vor.u32 %v2270_v40, %v2033_v41  ;;  %v1905_v37 = vld [vmem:[#allocation7 + $0x28] sm:$0xf0]  ;;  %v1900_v41 = vor.u32 %v2237_v31, %v1897_v32  ;;  %v2136_v48 = vor.u32 %v2299_v46, %v2135_v45  ;;  %v2263_v31 = vld [vmem:[#allocation7 + $0xd4] sm:$0xf] }
  0xe4   :  { %v740_v44 = vpack.c.bf16 %v739_v43, %v738_v42 }
  0xe5   :  { %1420 = vmatpush.bf16.msrb.mxu2 %v2036_v51  ;;  %v2300_v51 = vld [vmem:[#allocation7 + $0x1f4] sm:$0xf0] }
  0xe6   :  { %851 = vmatmul.bf16.vlgmr.msra.gmra.mxu0 %v740_v44  ;;  %865 = vmatmul.bf16.vlgmr.msra.gmra.mxu1 %v740_v44  ;;  %v2028_v44 = vor.u32 %v2269_v34, %v2025_v35  ;;  %v2242_v35 = vld [vmem:[#allocation7 + $0x24] sm:$0xf0] }
  0xe7   :  { %1379 = vmatpush.bf16.msra.mxu3 %v1992_v61  ;;  %v2287_v61 = vld [vmem:[#allocation7 + $0x194] sm:$0xf] }
  0xe8   :  { %1392 = vmatpush.bf16.msrb.mxu0 %v2028_v44 }
  0xe9   :  { %1421 = vmatpush.bf16.msrb.mxu2 %v2004_v2  ;;  %v2113_v2 = vld [vmem:[#allocation7 + $0x1b8] sm:$0xf0] }
  0xec   :  { %1393 = vmatpush.bf16.msrb.mxu0 %v1996_v52  ;;  %v2111_v52 = vld [vmem:[#allocation7 + $0x198] sm:$0xf] }
  0xed   :  { %1422 = vmatpush.bf16.msrb.mxu2 %v1972_v16 }
  0xf1   :  { %1423 = vmatpush.bf16.msrb.mxu2 %v1940_v30  ;;  %v2267_v30 = vld [vmem:[#allocation7 + $0xec] sm:$0xf0] }
 0x163   :  { %v852_v7 = vpop.f32.mrf.mxu0  ;;  %v866_v8 = vpop.f32.mrf.mxu1 }
 0x164   :  { %v2688_v14 = vadd.f32 %v852_v7, %v759_v53  ;;  %v867_v15 = vadd.f32 %v866_v8, %v760_v54  ;;  %v881_v7 = vld [vmem:[%s2722_s1] sm:$0xff]  ;;  %v1960_v8 = vor.u32 %v2257_v63, %v1959_v62  ;;  %v2105_v63 = vld [vmem:[#allocation7 + $0x1b0] sm:$0xf0] }
 0x166   :  { %871 = vst [vmem:[#allocation8] sm:$0xff] %v2688_v14  ;;  %v875_v24 = vmul.f32 0.5, %v867_v15  ;;  %1380 = vmatpush.bf16.msra.mxu3 %v1960_v8  ;;  %v2073_v8 = vld [vmem:[#allocation7 + $0x170] sm:$0xf0] }
 0x167   :  { %872 = vst [vmem:[#allocation8 + $0x8] sm:$0xff] %v867_v15  ;;  %v2076_v11 = vor.u32 %v2279_v6, %v2073_v8  ;;  %v2240_v6 = vld [vmem:[#allocation7 + $0x1c] sm:$0xf] }
 0x168   :  { %v877_v38 = vmul.f32 1.442695, %v875_v24 }
 0x16a   :  { %2315 = vpow2.f32 %v877_v38  ;;  %1381 = vmatpush.bf16.msra.mxu3 %v1928_v23  ;;  %v1896_v38 = vor.u32 %v2241_v28, %v1895_v27  ;;  %v2276_v23 = vld [vmem:[#allocation7 + $0x134] sm:$0xf0]  ;;  %v2049_v27 = vld [vmem:[#allocation7 + $0x138] sm:$0xf0] }
 0x16b   :  { %v854_v42 = vpop.f32.mrf.mxu0  ;;  %v868_v43 = vpop.f32.mrf.mxu1 }
 0x16c   :  { %v2695_v49 = vadd.f32 %v854_v42, %v759_v53  ;;  %v869_v50 = vadd.f32 %v868_v43, %v760_v54  ;;  %v2000_v53 = vor.u32 %v2266_v57, %v1999_v56  ;;  %v2253_v54 = vld [vmem:[#allocation7 + $0x84] sm:$0xf]  ;;  %v1904_v42 = vor.u32 %v2242_v35, %v1903_v33  ;;  %v2296_v56 = vld [vmem:[#allocation7 + $0x1dc] sm:$0xf]  ;;  %v2009_v33 = vld [vmem:[#allocation7 + $0xf0] sm:$0xf0] }
 0x16d   :  { %v1964_v9 = vor.u32 %v2253_v54, %v1961_v0  ;;  %v1908_v43 = vor.u32 %v2238_v36, %v1905_v37  ;;  %v2145_v57 = vld [vmem:[#allocation7 + $0x1f8] sm:$0xf0]  ;;  %v2108_v54 = vor.u32 %v2287_v61, %v2105_v63  ;;  %v2268_v35 = vld [vmem:[#allocation7 + $0xf4] sm:$0xf0]  ;;  %v2012_v36 = vor.u32 %v2263_v31, %v2009_v33 }
 0x16e   :  { %873 = vst [vmem:[#allocation8 + $0x10] sm:$0xff] %v2695_v49  ;;  %v876_v60 = vmul.f32 0.5, %v869_v50  ;;  %1407 = vmatpush.bf16.msrb.mxu1 %v2000_v53  ;;  %1382 = vmatpush.bf16.msra.mxu3 %v1896_v38  ;;  %v2148_v58 = vor.u32 %v2296_v56, %v2145_v57  ;;  %v2292_v53 = vld [vmem:[#allocation7 + $0x1b4] sm:$0xf0]  ;;  %v2264_v38 = vld [vmem:[#allocation7 + $0xdc] sm:$0xf] }
 0x16f   :  { %874 = vst [vmem:[#allocation8 + $0x18] sm:$0xff] %v869_v50  ;;  %1394 = vmatpush.bf16.msrb.mxu0 %v1964_v9  ;;  %1424 = vmatpush.bf16.msrb.mxu2 %v1908_v43  ;;  %v2137_v50 = vld [vmem:[#allocation7 + $0x1f0] sm:$0xf0]  ;;  %v2112_v0 = vor.u32 %v2292_v53, %v2111_v52  ;;  %v2079_v9 = vld [vmem:[#allocation7 + $0x158] sm:$0xf] }
 0x170   :  { %v879_v1 = vmul.f32 1.442695, %v876_v60  ;;  %v2316_v15 = vpop.eup %2315  ;;  %v2291_v60 = vld [vmem:[#allocation7 + $0x1ac] sm:$0xf0]  ;;  %v2255_v43 = vld [vmem:[#allocation7 + $0x94] sm:$0xf] }
 0x171   :  { %v883_v24 = vmul.f32 %v2316_v15, %v881_v7  ;;  %v2104_v62 = vor.u32 %v2291_v60, %v2103_v59  ;;  %v2072_v7 = vor.u32 %v2283_v5, %v2071_v4  ;;  %v2081_v15 = vld [vmem:[#allocation7 + $0x178] sm:$0xf0]  ;;  %v2247_v57 = vld [vmem:[#allocation7 + $0x54] sm:$0xf]  ;;  %v1951_v59 = vld [vmem:[#allocation7 + $0x58] sm:$0xf] }
 0x172   :  { %2317 = vpow2.f32 %v879_v1  ;;  %1408 = vmatpush.bf16.msrb.mxu1 %v1968_v10  ;;  %1431 = vmatpush.bf16.msrb.mxu3 %v2136_v48  ;;  %v2288_v1 = vld [vmem:[#allocation7 + $0x19c] sm:$0xf]  ;;  %v2284_v10 = vld [vmem:[#allocation7 + $0x174] sm:$0xf0]  ;;  %v2084_v16 = vor.u32 %v2280_v13, %v2081_v15  ;;  %v2314_v13 = vld [vmem:[%s2728_s7] ss:$0 sm:$0xff] }
 0x173   :  { %v885_v39 = vadd.f32 %v883_v24, %v2688_v14  ;;  %1395 = vmatpush.bf16.msrb.mxu0 %v1932_v25  ;;  %v2143_v14 = vld [vmem:[#allocation7 + $0x1d8] sm:$0xf]  ;;  %v2116_v3 = vor.u32 %v2288_v1, %v2113_v2  ;;  %v2080_v12 = vor.u32 %v2284_v10, %v2079_v9  ;;  %v2044_v24 = vor.u32 %v2271_v19, %v2041_v21  ;;  %v1953_v63 = vld [vmem:[#allocation7 + $0x78] sm:$0xf0]  ;;  %v2239_v1 = vld [vmem:[#allocation7 + $0x14] sm:$0xf] }
 0x174   :  { %v2144_v55 = vor.u32 %v2300_v51, %v2143_v14  ;;  %v2260_v48 = vld [vmem:[#allocation7 + $0xb4] sm:$0xf0]  ;;  %v1985_v51 = vld [vmem:[#allocation7 + $0xb8] sm:$0xf0]  ;;  %s1509_s7 = sshll.u32 %s2731_s10, 4  ;;  %v1037_v21 = vld [vmem:[%s2730_s9] sm:$0xff]  ;;  %s1510_s7 = int_to_ptr.hbm [resolvable:$true] %s1509_s7 }
 0x175   :  { %v2252_v61 = vld [vmem:[#allocation7 + $0x74] sm:$0xf0]  ;;  %1515 = dma.vmem_to_hbm [thread:$0]  %s1508_s30, 512, %s1510_s7, [#allocation4], %s2455_s13, %s2455_s13, %s2456_s2  }
 0x176   :  { %1409 = vmatpush.bf16.msrb.mxu1 %v1936_v26  ;;  %1432 = vmatpush.bf16.msrb.mxu3 %v2104_v62  ;;  %v2272_v26 = vld [vmem:[#allocation7 + $0x11c] sm:$0xf]  ;;  %v1952_v53 = vor.u32 %v2252_v61, %v1951_v59  ;;  %v1919_v4 = vld [vmem:[#allocation7 + $0x18] sm:$0xf]  ;;  %s2457_s9 = smov [#allocation9]  }
 0x177   :  { %1396 = vmatpush.bf16.msrb.mxu0 %v1900_v41  ;;  %v2052_v28 = vor.u32 %v2272_v26, %v2049_v27  ;;  %v2248_v62 = vld [vmem:[#allocation7 + $0x5c] sm:$0xf]  ;;  %v2244_v5 = vld [vmem:[#allocation7 + $0x34] sm:$0xf0]  ;;  %s1520_s10 = sshll.u32 %s2457_s9, 4  ;;  %s1521_s10 = int_to_ptr.vmem [resolvable:$true] %s1520_s10 }
 0x178   :  { %v2318_v29 = vpop.eup %2317  ;;  %v1956_v2 = vor.u32 %v2248_v62, %v1953_v63  ;;  %v1920_v10 = vor.u32 %v2244_v5, %v1919_v4 }
 0x179   :  { %v884_v34 = vmul.f32 %v2318_v29, %v882_v22  ;;  %v2047_v22 = vld [vmem:[#allocation7 + $0x118] sm:$0xf]  ;;  %v2007_v29 = vld [vmem:[#allocation7 + $0xd0] sm:$0xf] }
 0x17a   :  { %1410 = vmatpush.bf16.msrb.mxu1 %v1904_v42  ;;  %1433 = vmatpush.bf16.msrb.mxu3 %v2072_v7  ;;  %v2048_v25 = vor.u32 %v2276_v23, %v2047_v22  ;;  %v2008_v32 = vor.u32 %v2267_v30, %v2007_v29  ;;  %v2259_v42 = vld [vmem:[#allocation7 + $0xac] sm:$0xf0]  ;;  %v1921_v7 = vld [vmem:[#allocation7 + $0x38] sm:$0xf0]  ;;  %v1040_v22 = vperm.slane %v1037_v21, 1  ;;  %v1041_v23 = vperm.slane %v1037_v21, 2 }
 0x17b   :  { %v886_v40 = vadd.f32 %v884_v34, %v2695_v49  ;;  %v2140_v49 = vor.u32 %v2295_v47, %v2137_v50  ;;  %v2015_v34 = vld [vmem:[#allocation7 + $0xd8] sm:$0xf]  ;;  %v2256_v50 = vld [vmem:[#allocation7 + $0x9c] sm:$0xf]  ;;  %v1042_v29 = vperm.slane %v1037_v21, 3 }
 0x17c   :  { %v2016_v37 = vor.u32 %v2268_v35, %v2015_v34  ;;  %v1983_v47 = vld [vmem:[#allocation7 + $0x98] sm:$0xf]  ;;  %v1988_v56 = vor.u32 %v2256_v50, %v1985_v51  ;;  %v1046_v50 = vperm.slane %v1037_v21, 7 }
 0x17d   :  { %v887_v44 = vpack.c.bf16 %v886_v40, %v885_v39  ;;  %1445 = vmatpush.bf16.msra.mxu0 %v2140_v49  ;;  %v2017_v39 = vld [vmem:[#allocation7 + $0xf8] sm:$0xf0]  ;;  %v1975_v40 = vld [vmem:[#allocation7 + $0x90] sm:$0xf]  ;;  %v1984_v14 = vor.u32 %v2260_v48, %v1983_v47  ;;  %v1043_v48 = vperm.slane %v1037_v21, 4 }
 0x17e   :  { %1459 = vmatpush.bf16.msra.mxu1 %v2144_v55  ;;  %1434 = vmatpush.bf16.msrb.mxu3 %v2040_v20  ;;  %v2020_v41 = vor.u32 %v2264_v38, %v2017_v39  ;;  %v1976_v45 = vor.u32 %v2259_v42, %v1975_v40  ;;  %v1943_v49 = vld [vmem:[#allocation7 + $0x50] sm:$0xf]  ;;  %v1044_v38 = vperm.slane %v1037_v21, 5  ;;  %v1045_v40 = vperm.slane %v1037_v21, 6 }
 0x17f   :  { %964 = vmatmul.bf16.vlgmr.msra.gmra.mxu2 %v887_v44  ;;  %v1977_v44 = vld [vmem:[#allocation7 + $0xb0] sm:$0xf0]  ;;  %v2251_v55 = vld [vmem:[#allocation7 + $0x6c] sm:$0xf0] }
 0x180   :  { %1473 = vmatpush.bf16.msra.mxu2 %v2148_v58  ;;  %v1980_v46 = vor.u32 %v2255_v43, %v1977_v44  ;;  %v1945_v58 = vld [vmem:[#allocation7 + $0x70] sm:$0xf0]  ;;  %v1944_v60 = vor.u32 %v2251_v55, %v1943_v49 }
 0x181   :  { %1446 = vmatpush.bf16.msra.mxu0 %v2108_v54  ;;  %v1948_v52 = vor.u32 %v2247_v57, %v1945_v58  ;;  %v1911_v54 = vld [vmem:[#allocation7 + $0x10] sm:$0xf] }
 0x182   :  { %1460 = vmatpush.bf16.msra.mxu1 %v2112_v0  ;;  %1435 = vmatpush.bf16.msrb.mxu3 %v2008_v32  ;;  %v2243_v0 = vld [vmem:[#allocation7 + $0x2c] sm:$0xf0] }
 0x183   :  { %v1912_v8 = vor.u32 %v2243_v0, %v1911_v54 }
 0x184   :  { %1474 = vmatpush.bf16.msra.mxu2 %v2116_v3  ;;  %v1913_v3 = vld [vmem:[#allocation7 + $0x30] sm:$0xf0] }
 0x185   :  { %1447 = vmatpush.bf16.msra.mxu0 %v2076_v11  ;;  %v1916_v9 = vor.u32 %v2239_v1, %v1913_v3  ;;  %v1924_v11 = vor.u32 %v2240_v6, %v1921_v7 }
 0x186   :  { %1461 = vmatpush.bf16.msra.mxu1 %v2080_v12  ;;  %1436 = vmatpush.bf16.msrb.mxu3 %v1976_v45 }
 0x188   :  { %1475 = vmatpush.bf16.msra.mxu2 %v2084_v16 }
 0x189   :  { %1448 = vmatpush.bf16.msra.mxu0 %v2044_v24 }
 0x18a   :  { %1462 = vmatpush.bf16.msra.mxu1 %v2048_v25  ;;  %1437 = vmatpush.bf16.msrb.mxu3 %v1944_v60 }
 0x18c   :  { %1476 = vmatpush.bf16.msra.mxu2 %v2052_v28  ;;  %v1039_v28 = vperm.slane %v1037_v21, 0 }
 0x18d   :  { %1449 = vmatpush.bf16.msra.mxu0 %v2012_v36 }
 0x18e   :  { %1463 = vmatpush.bf16.msra.mxu1 %v2016_v37  ;;  %1438 = vmatpush.bf16.msrb.mxu3 %v1912_v8 }
 0x190   :  { %1477 = vmatpush.bf16.msra.mxu2 %v2020_v41 }
 0x191   :  { %1450 = vmatpush.bf16.msra.mxu0 %v1980_v46 }
 0x192   :  { %1464 = vmatpush.bf16.msra.mxu1 %v1984_v14 }
 0x194   :  { %1478 = vmatpush.bf16.msra.mxu2 %v1988_v56 }
 0x195   :  { %1451 = vmatpush.bf16.msra.mxu0 %v1948_v52 }
 0x196   :  { %1465 = vmatpush.bf16.msra.mxu1 %v1952_v53 }
 0x198   :  { %1479 = vmatpush.bf16.msra.mxu2 %v1956_v2 }
 0x199   :  { %1452 = vmatpush.bf16.msra.mxu0 %v1916_v9 }
 0x19a   :  { %1466 = vmatpush.bf16.msra.mxu1 %v1920_v10 }
 0x19c   :  { %1480 = vmatpush.bf16.msra.mxu2 %v1924_v11 }
 0x202   :  { %v965_v12 = vpop.f32.mrf.mxu2 }
 0x203   :  { %v966_v15 = vadd.f32 %v2314_v13, %v965_v12 }
 0x205   :  { %v970_v18 = vmax.f32 %v966_v15, 0.0 }
 0x20a   :  { %v967_v16 = vpop.f32.mrf.mxu2 }
 0x20b   :  { %v968_v17 = vadd.f32 %v2314_v13, %v967_v16 }
 0x20d   :  { %v971_v19 = vmax.f32 %v968_v17, 0.0 }
 0x20f   :  { %v972_v20 = vpack.c.bf16 %v971_v19, %v970_v18 }
 0x211   :  { %1383 = vmatmul.bf16.vlgmr.msra.gmra.mxu3 %v972_v20  ;;  %1397 = vmatmul.bf16.vlgmr.msrb.gmra.mxu0 %v972_v20 }
 0x212   :  { %1411 = vmatmul.bf16.vlgmr.msrb.gmra.mxu1 %v972_v20  ;;  %1425 = vmatmul.bf16.vlgmr.msrb.gmra.mxu2 %v972_v20 }
 0x221   :  { %1439 = vmatmul.bf16.vlgmr.msrb.gmra.mxu3 %v972_v20  ;;  %1453 = vmatmul.bf16.vlgmr.msra.gmra.mxu0 %v972_v20 }
 0x222   :  { %1467 = vmatmul.bf16.vlgmr.msra.gmra.mxu1 %v972_v20  ;;  %1481 = vmatmul.bf16.vlgmr.msra.gmra.mxu2 %v972_v20 }
 0x28e   :  { %v1398_v24 = vpop.f32.mrf.mxu0 }
 0x28f   :  { %v1399_v25 = vadd.f32 %v1398_v24, %v1040_v22  ;;  %v1412_v26 = vpop.f32.mrf.mxu1 }
 0x290   :  { %v1413_v27 = vadd.f32 %v1412_v26, %v1041_v23 }
 0x291   :  { %1488 = vst [vmem:[#allocation9 + $0x8] sm:$0xff] %v1399_v25 }
 0x292   :  { %1489 = vst [vmem:[#allocation9 + $0x10] sm:$0xff] %v1413_v27 }
 0x294   :  { %v1384_v30 = vpop.f32.mrf.mxu3 }
 0x295   :  { %v1385_v31 = vadd.f32 %v1384_v30, %v1039_v28  ;;  %v1426_v32 = vpop.f32.mrf.mxu2 }
 0x296   :  { %v1427_v33 = vadd.f32 %v1426_v32, %v1042_v29  ;;  %v1400_v34 = vpop.f32.mrf.mxu0 }
 0x297   :  { %1487 = vst [vmem:[#allocation9] sm:$0xff] %v1385_v31  ;;  %v1401_v35 = vadd.f32 %v1400_v34, %v1040_v22  ;;  %v1414_v36 = vpop.f32.mrf.mxu1 }
 0x298   :  { %1490 = vst [vmem:[#allocation9 + $0x18] sm:$0xff] %v1427_v33  ;;  %v1415_v37 = vadd.f32 %v1414_v36, %v1041_v23 }
 0x299   :  { %1496 = vst [vmem:[#allocation9 + $0x48] sm:$0xff] %v1401_v35 }
 0x29a   :  { %1497 = vst [vmem:[#allocation9 + $0x50] sm:$0xff] %v1415_v37 }
 0x29c   :  { %v1386_v39 = vpop.f32.mrf.mxu3 }
 0x29d   :  { %v1387_v41 = vadd.f32 %v1386_v39, %v1039_v28  ;;  %v1428_v42 = vpop.f32.mrf.mxu2 }
 0x29e   :  { %v1429_v43 = vadd.f32 %v1428_v42, %v1042_v29  ;;  %v1454_v44 = vpop.f32.mrf.mxu0 }
 0x29f   :  { %1495 = vst [vmem:[#allocation9 + $0x40] sm:$0xff] %v1387_v41  ;;  %v1455_v45 = vadd.f32 %v1454_v44, %v1044_v38  ;;  %v1468_v46 = vpop.f32.mrf.mxu1 }
 0x2a0   :  { %1498 = vst [vmem:[#allocation9 + $0x58] sm:$0xff] %v1429_v43  ;;  %v1469_v47 = vadd.f32 %v1468_v46, %v1045_v40 }
 0x2a1   :  { %1492 = vst [vmem:[#allocation9 + $0x28] sm:$0xff] %v1455_v45 }
 0x2a2   :  { %1493 = vst [vmem:[#allocation9 + $0x30] sm:$0xff] %v1469_v47 }
 0x2a4   :  { %v1440_v14 = vpop.f32.mrf.mxu3 }
 0x2a5   :  { %v1441_v51 = vadd.f32 %v1440_v14, %v1043_v48  ;;  %v1482_v49 = vpop.f32.mrf.mxu2 }
 0x2a6   :  { %v1483_v55 = vadd.f32 %v1482_v49, %v1046_v50  ;;  %v1456_v56 = vpop.f32.mrf.mxu0 }
 0x2a7   :  { %1491 = vst [vmem:[#allocation9 + $0x20] sm:$0xff] %v1441_v51  ;;  %v1457_v57 = vadd.f32 %v1456_v56, %v1044_v38  ;;  %v1470_v58 = vpop.f32.mrf.mxu1 }
 0x2a8   :  { %1494 = vst [vmem:[#allocation9 + $0x38] sm:$0xff] %v1483_v55  ;;  %v1471_v59 = vadd.f32 %v1470_v58, %v1045_v40 }
 0x2a9   :  { %1500 = vst [vmem:[#allocation9 + $0x68] sm:$0xff] %v1457_v57 }
 0x2aa   :  { %1501 = vst [vmem:[#allocation9 + $0x70] sm:$0xff] %v1471_v59 }
 0x2ac   :  { %v1442_v60 = vpop.f32.mrf.mxu3 }
 0x2ad   :  { %v1443_v61 = vadd.f32 %v1442_v60, %v1043_v48  ;;  %v1484_v62 = vpop.f32.mrf.mxu2 }
 0x2ae   :  { %v1485_v63 = vadd.f32 %v1484_v62, %v1046_v50 }
 0x2af   :  { %1499 = vst [vmem:[#allocation9 + $0x60] sm:$0xff] %v1443_v61 }
 0x2b0   :  { %1502 = vst [vmem:[#allocation9 + $0x78] sm:$0xff] %v1485_v63 }
 0x2b1   :  { %1528 = dma.vmem_to_hbm [thread:$0]  %s1521_s10, 2048, %s1523_s17, [#allocation10], %s2458_s18, %s2458_s18, %s2448_s25  }
 0x2b2   :  { %2443 = dma.done.wait [#allocation4], 512  }
 0x2b3   :  { %2444 = vsyncadd [#allocation4], 4294966784 }
 0x2b4   :  { %2445 = dma.done.wait [#allocation10], 2048  }
 0x2b5   :  { %2446 = vsyncadd [#allocation10], 4294965248 }
 0x2b6   :  { %1537 = vsyncpa [#allocation3], 1 }
 0x2b7   :  { %1538 = vsyncpa [#allocation6], 1 }
 0x2b8   :  { %1539 = vsyncpa [#allocation4], 1 }
 0x2b9   :  { %1540 = vsyncpa [#allocation10], 1 }

</bundles_post_ra>
